<compile_context>
chip_gen: v6e
topology: v6e:2x2x1
jax: 0.10.0
libtpu: 0.0.40
codegen_flags: <defaults>
</compile_context>

<pallas_src>
import functools
import math

import jax
import jax.numpy as jnp
from jax.experimental import pallas as pl
from jax.experimental.pallas import tpu as pltpu


def _round_up(x, m):
    return ((x + m - 1) // m) * m


# ----------------------------- linear kernels ------------------------------ #
def _linear_kernel(x_ref, w_ref, b_ref, o_ref):
    # x: (TM, in) f32 ; w: (in, out) bf16 (pre-transposed) ; b: (1, out) f32
    x = x_ref[...].astype(jnp.bfloat16)
    o_ref[...] = (
        jnp.dot(x, w_ref[...], preferred_element_type=jnp.float32) + b_ref[...]
    )


def linear(x, w_t, b, *, tm=256):
    """x: (N, in) f32 ; w_t: (in, out) bf16 ; b: (out,) f32 -> (N, out) f32."""
    n, in_dim = x.shape
    out_dim = w_t.shape[1]
    tm = min(tm, _round_up(n, 8))
    grid = (pl.cdiv(n, tm),)
    return pl.pallas_call(
        _linear_kernel,
        out_shape=jax.ShapeDtypeStruct((n, out_dim), jnp.float32),
        grid=grid,
        in_specs=[
            pl.BlockSpec((tm, in_dim), lambda i: (i, 0)),
            pl.BlockSpec((in_dim, out_dim), lambda i: (0, 0)),  # weight stays resident
            pl.BlockSpec((1, out_dim), lambda i: (0, 0)),
        ],
        out_specs=pl.BlockSpec((tm, out_dim), lambda i: (i, 0)),
        compiler_params=pltpu.CompilerParams(dimension_semantics=("parallel",)),
    )(x, w_t, b.reshape(1, out_dim))


def _qkv_kernel(xk_ref, xv_ref, xq_ref, wk_ref, wv_ref, wq_ref,
                bk_ref, bv_ref, bq_ref, ok_ref, ov_ref, oq_ref):
    ok_ref[...] = (jnp.dot(xk_ref[...].astype(jnp.bfloat16), wk_ref[...],
                           preferred_element_type=jnp.float32) + bk_ref[...])
    ov_ref[...] = (jnp.dot(xv_ref[...].astype(jnp.bfloat16), wv_ref[...],
                           preferred_element_type=jnp.float32) + bv_ref[...])
    oq_ref[...] = (jnp.dot(xq_ref[...].astype(jnp.bfloat16), wq_ref[...],
                           preferred_element_type=jnp.float32) + bq_ref[...])


def qkv_linear(xk, xv, xq, wk_t, wv_t, wq_t, bk, bv, bq, *, tm=256):
    """Fused K/V/Q projections: one pallas_call / one pipeline when the three
    activations have the same row count (self-attention & demo case)."""
    n, in_dim = xk.shape
    out_dim = wk_t.shape[1]
    tm = min(tm, _round_up(n, 8))
    grid = (pl.cdiv(n, tm),)
    x_spec = pl.BlockSpec((tm, in_dim), lambda i: (i, 0))
    w_spec = pl.BlockSpec((in_dim, out_dim), lambda i: (0, 0))
    b_spec = pl.BlockSpec((1, out_dim), lambda i: (0, 0))
    o_spec = pl.BlockSpec((tm, out_dim), lambda i: (i, 0))
    o_shape = jax.ShapeDtypeStruct((n, out_dim), jnp.float32)
    return pl.pallas_call(
        _qkv_kernel,
        out_shape=(o_shape, o_shape, o_shape),
        grid=grid,
        in_specs=[x_spec, x_spec, x_spec, w_spec, w_spec, w_spec,
                  b_spec, b_spec, b_spec],
        out_specs=(o_spec, o_spec, o_spec),
        compiler_params=pltpu.CompilerParams(dimension_semantics=("parallel",)),
    )(xk, xv, xq, wk_t, wv_t, wq_t,
      bk.reshape(1, out_dim), bv.reshape(1, out_dim), bq.reshape(1, out_dim))


# --------------------------- attention kernel ------------------------------ #
def _attn_kernel(q_ref, k_ref, v_ref, m_ref, ctx_ref, attn_ref=None, *, head_count):
    # q: (1, TQ, D)  k,v: (1, Lk, D)  m: (1, TQ, Lk) int8
    tq, dm = q_ref.shape[1], q_ref.shape[2]
    lk = k_ref.shape[1]
    d = dm // head_count
    scale = jnp.float32(1.0 / math.sqrt(d))

    q_all = (q_ref[0] * scale).astype(jnp.bfloat16)   # (TQ, D)
    k_all = k_ref[0].astype(jnp.bfloat16)             # (Lk, D)
    v_all = v_ref[0].astype(jnp.bfloat16)             # (Lk, D)
    masked = m_ref[0] != 0                            # (TQ, Lk) bool
    neg_big = jnp.float32(-1e18)

    # Static per-head loop inside a single grid step (amortizes the ~0.35us
    # per-step overhead and avoids any HBM-level head transpose).
    for h in range(head_count):
        sl = slice(h * d, (h + 1) * d)
        # q_h @ k_h^T via dot_general contracting the head dim (no .T).
        scores = jax.lax.dot_general(
            q_all[:, sl], k_all[:, sl],
            dimension_numbers=(((1,), (1,)), ((), ())),
            preferred_element_type=jnp.float32)        # (TQ, Lk) f32
        scores = jnp.where(masked, neg_big, scores)

        s_max = jnp.max(scores, axis=-1, keepdims=True)
        e = jnp.exp(scores - s_max)
        denom = jnp.sum(e, axis=-1, keepdims=True)
        p = e * pl.reciprocal(denom, approx=True)      # (TQ, Lk) f32

        if attn_ref is not None:
            attn_ref[0, h] = p

        ctx_ref[0, :, sl] = jnp.dot(
            p.astype(jnp.bfloat16), v_all[:, sl],
            preferred_element_type=jnp.float32)


def attention(q, k, v, mask_i8, head_count, *, tq=256, need_attn=True):
    """q: (B,Lq,D)  k,v: (B,Lk,D)  mask_i8: (B,Lq,Lk) int8 -> (ctx, attn)."""
    B, Lq, D = q.shape
    Lk = k.shape[1]
    tq = min(tq, _round_up(Lq, 8))
    grid = (B, pl.cdiv(Lq, tq))

    out_shape = [jax.ShapeDtypeStruct((B, Lq, D), jnp.float32)]
    out_specs = [pl.BlockSpec((1, tq, D), lambda b, i: (b, i, 0))]
    if need_attn:
        out_shape.append(jax.ShapeDtypeStruct((B, head_count, Lq, Lk), jnp.float32))
        out_specs.append(
            pl.BlockSpec((1, head_count, tq, Lk), lambda b, i: (b, 0, i, 0)))

    res = pl.pallas_call(
        functools.partial(_attn_kernel, head_count=head_count),
        out_shape=tuple(out_shape),
        grid=grid,
        in_specs=[
            pl.BlockSpec((1, tq, D), lambda b, i: (b, i, 0)),
            pl.BlockSpec((1, Lk, D), lambda b, i: (b, 0, 0)),   # resident across q-tiles
            pl.BlockSpec((1, Lk, D), lambda b, i: (b, 0, 0)),
            pl.BlockSpec((1, tq, Lk), lambda b, i: (b, i, 0)),
        ],
        out_specs=tuple(out_specs),
        compiler_params=pltpu.CompilerParams(
            dimension_semantics=("parallel", "parallel")),
    )(q, k, v, mask_i8)

    if need_attn:
        return res[0], res[1]
    return res[0], None


# --------------------------- module forward -------------------------------- #
def init_params(key, model_dim):
    """Deterministic init of the 4 nn.Linear layers (W: (out,in), b: (out,))."""
    ks = jax.random.split(key, 8)
    bound = 1.0 / math.sqrt(model_dim)

    def lin(kw, kb):
        w = jax.random.uniform(kw, (model_dim, model_dim), jnp.float32, -bound, bound)
        b = jax.random.uniform(kb, (model_dim,), jnp.float32, -bound, bound)
        return w, b

    return {
        "keys": lin(ks[0], ks[1]),
        "values": lin(ks[2], ks[3]),
        "query": lin(ks[4], ks[5]),
        "final": lin(ks[6], ks[7]),
    }


def multi_headed_attention(params, key, value, query, mask, head_count,
                           *, need_attn=True):
    B, key_len, model_dim = key.shape
    query_len = query.shape[1]

    # Pre-transpose weights to (in, out) and cast to bf16 once (MXU operands);
    # biases stay f32 and are added after f32 accumulation.
    wk_t = params["keys"][0].T.astype(jnp.bfloat16)
    wv_t = params["values"][0].T.astype(jnp.bfloat16)
    wq_t = params["query"][0].T.astype(jnp.bfloat16)
    wf_t = params["final"][0].T.astype(jnp.bfloat16)
    bk, bv, bq, bf = (params["keys"][1], params["values"][1],
                      params["query"][1], params["final"][1])

    if mask is None:
        mask_i8 = jnp.zeros((B, query_len, key_len), jnp.int8)
    else:
        mask_i8 = mask.astype(jnp.int8)

    if key_len == query_len:
        k_p, v_p, q_p = qkv_linear(
            key.reshape(-1, model_dim), value.reshape(-1, model_dim),
            query.reshape(-1, model_dim), wk_t, wv_t, wq_t, bk, bv, bq)
    else:  # cross-attention with different lengths: separate tiled linears
        k_p = linear(key.reshape(-1, model_dim), wk_t, bk)
        v_p = linear(value.reshape(-1, model_dim), wv_t, bv)
        q_p = linear(query.reshape(-1, model_dim), wq_t, bq)

    k_p = k_p.reshape(B, key_len, model_dim)
    v_p = v_p.reshape(B, key_len, model_dim)
    q_p = q_p.reshape(B, query_len, model_dim)

    # Head split/merge happens inside the attention kernel: context comes back
    # directly as (B, query_len, model_dim), ready for the final linear.
    ctx, attn = attention(q_p, k_p, v_p, mask_i8, head_count, need_attn=need_attn)

    output = linear(ctx.reshape(-1, model_dim), wf_t, bf).reshape(
        B, query_len, model_dim)
    return output, attn


# ---------------------------------- main ----------------------------------- #
if __name__ == "__main__":
    B = 2          # batch
    SEQ = 8        # key_len == query_len
    MODEL_DIM = 32
    HEADS = 4

    root = jax.random.PRNGKey(0)
    k_params, k_k, k_v, k_q, k_m = jax.random.split(root, 5)

    params = init_params(k_params, MODEL_DIM)
    key_in = jax.random.normal(k_k, (B, SEQ, MODEL_DIM), jnp.float32)
    value_in = jax.random.normal(k_v, (B, SEQ, MODEL_DIM), jnp.float32)
    query_in = jax.random.normal(k_q, (B, SEQ, MODEL_DIM), jnp.float32)
    # mask: nonzero == masked out (matches torch masked_fill semantics)
    mask = (jax.random.uniform(k_m, (B, SEQ, SEQ)) < 0.2).astype(jnp.int32)

    out, attns = jax.jit(
        lambda p, k, v, q, m: multi_headed_attention(p, k, v, q, m, HEADS)
    )(params, key_in, value_in, query_in, mask)

    jax.block_until_ready((out, attns))
    assert out.shape == (B, SEQ, MODEL_DIM)
    assert attns.shape == (B, HEADS, SEQ, SEQ)
    print("KERNEL_OK")
</pallas_src>

<mosaic_0001>
module attributes {stable_mosaic.version = 11 : i64} {
  func.func @_qkv_kernel(%arg0: i32, %arg1: memref<16x32xf32, #tpu.memory_space<vmem>>, %arg2: memref<16x32xf32, #tpu.memory_space<vmem>>, %arg3: memref<16x32xf32, #tpu.memory_space<vmem>>, %arg4: memref<32x32xbf16, #tpu.memory_space<vmem>>, %arg5: memref<32x32xbf16, #tpu.memory_space<vmem>>, %arg6: memref<32x32xbf16, #tpu.memory_space<vmem>>, %arg7: memref<1x32xf32, #tpu.memory_space<vmem>>, %arg8: memref<1x32xf32, #tpu.memory_space<vmem>>, %arg9: memref<1x32xf32, #tpu.memory_space<vmem>>, %arg10: memref<16x32xf32, #tpu.memory_space<vmem>>, %arg11: memref<16x32xf32, #tpu.memory_space<vmem>>, %arg12: memref<16x32xf32, #tpu.memory_space<vmem>>) attributes {dimension_semantics = [#tpu.dimension_semantics<parallel>], iteration_bounds = array<i64: 1>, scalar_prefetch = 0 : i64, scratch_operands = 0 : i64, tpu.core_type = #tpu.core_type<tc>, window_params = [{transform_indices = @transform_0, window_bounds = array<i64: 16, 32>}, {transform_indices = @transform_1, window_bounds = array<i64: 16, 32>}, {transform_indices = @transform_2, window_bounds = array<i64: 16, 32>}, {pipeline_mode = #tpu.pipeline_mode<synchronous>, transform_indices = @transform_3, window_bounds = array<i64: 32, 32>}, {pipeline_mode = #tpu.pipeline_mode<synchronous>, transform_indices = @transform_4, window_bounds = array<i64: 32, 32>}, {pipeline_mode = #tpu.pipeline_mode<synchronous>, transform_indices = @transform_5, window_bounds = array<i64: 32, 32>}, {pipeline_mode = #tpu.pipeline_mode<synchronous>, transform_indices = @transform_6, window_bounds = array<i64: 1, 32>}, {pipeline_mode = #tpu.pipeline_mode<synchronous>, transform_indices = @transform_7, window_bounds = array<i64: 1, 32>}, {pipeline_mode = #tpu.pipeline_mode<synchronous>, transform_indices = @transform_8, window_bounds = array<i64: 1, 32>}, {transform_indices = @transform_9, window_bounds = array<i64: 16, 32>}, {transform_indices = @transform_10, window_bounds = array<i64: 16, 32>}, {transform_indices = @transform_11, window_bounds = array<i64: 16, 32>}]} {
    %c0 = arith.constant 0 : index
    %c0_0 = arith.constant 0 : index
    %0 = vector.load %arg1[%c0, %c0_0] : memref<16x32xf32, #tpu.memory_space<vmem>>, vector<16x32xf32>
    %1 = arith.truncf %0 : vector<16x32xf32> to vector<16x32xbf16>
    %c0_1 = arith.constant 0 : index
    %c0_2 = arith.constant 0 : index
    %2 = vector.load %arg4[%c0_1, %c0_2] : memref<32x32xbf16, #tpu.memory_space<vmem>>, vector<32x32xbf16>
    %cst = arith.constant dense<0.000000e+00> : vector<16x32xf32>
    %3 = tpu.matmul %1, %2, %cst {dimension_numbers = #tpu.dot_dimension_numbers<[1], [0], [0], [1], [0, 0, 1, 1], [], []>} : vector<16x32xbf16>, vector<32x32xbf16>, vector<16x32xf32> -> vector<16x32xf32>
    %c0_3 = arith.constant 0 : index
    %c0_4 = arith.constant 0 : index
    %4 = vector.load %arg7[%c0_3, %c0_4] : memref<1x32xf32, #tpu.memory_space<vmem>>, vector<1x32xf32>
    %5 = vector.broadcast %4 : vector<1x32xf32> to vector<16x32xf32>
    %6 = arith.addf %3, %5 : vector<16x32xf32>
    %c0_5 = arith.constant 0 : index
    %c0_6 = arith.constant 0 : index
    %7 = vector.load %arg10[%c0_5, %c0_6] : memref<16x32xf32, #tpu.memory_space<vmem>>, vector<16x32xf32>
    tpu.vector_store %arg10[%c0_5, %c0_6], %6 {strides = array<i32>} : memref<16x32xf32, #tpu.memory_space<vmem>>, vector<16x32xf32>,
    %c0_7 = arith.constant 0 : index
    %c0_8 = arith.constant 0 : index
    %8 = vector.load %arg2[%c0_7, %c0_8] : memref<16x32xf32, #tpu.memory_space<vmem>>, vector<16x32xf32>
    %9 = arith.truncf %8 : vector<16x32xf32> to vector<16x32xbf16>
    %c0_9 = arith.constant 0 : index
    %c0_10 = arith.constant 0 : index
    %10 = vector.load %arg5[%c0_9, %c0_10] : memref<32x32xbf16, #tpu.memory_space<vmem>>, vector<32x32xbf16>
    %cst_11 = arith.constant dense<0.000000e+00> : vector<16x32xf32>
    %11 = tpu.matmul %9, %10, %cst_11 {dimension_numbers = #tpu.dot_dimension_numbers<[1], [0], [0], [1], [0, 0, 1, 1], [], []>} : vector<16x32xbf16>, vector<32x32xbf16>, vector<16x32xf32> -> vector<16x32xf32>
    %c0_12 = arith.constant 0 : index
    %c0_13 = arith.constant 0 : index
    %12 = vector.load %arg8[%c0_12, %c0_13] : memref<1x32xf32, #tpu.memory_space<vmem>>, vector<1x32xf32>
    %13 = vector.broadcast %12 : vector<1x32xf32> to vector<16x32xf32>
    %14 = arith.addf %11, %13 : vector<16x32xf32>
    %c0_14 = arith.constant 0 : index
    %c0_15 = arith.constant 0 : index
    %15 = vector.load %arg11[%c0_14, %c0_15] : memref<16x32xf32, #tpu.memory_space<vmem>>, vector<16x32xf32>
    tpu.vector_store %arg11[%c0_14, %c0_15], %14 {strides = array<i32>} : memref<16x32xf32, #tpu.memory_space<vmem>>, vector<16x32xf32>,
    %c0_16 = arith.constant 0 : index
    %c0_17 = arith.constant 0 : index
    %16 = vector.load %arg3[%c0_16, %c0_17] : memref<16x32xf32, #tpu.memory_space<vmem>>, vector<16x32xf32>
    %17 = arith.truncf %16 : vector<16x32xf32> to vector<16x32xbf16>
    %c0_18 = arith.constant 0 : index
    %c0_19 = arith.constant 0 : index
    %18 = vector.load %arg6[%c0_18, %c0_19] : memref<32x32xbf16, #tpu.memory_space<vmem>>, vector<32x32xbf16>
    %cst_20 = arith.constant dense<0.000000e+00> : vector<16x32xf32>
    %19 = tpu.matmul %17, %18, %cst_20 {dimension_numbers = #tpu.dot_dimension_numbers<[1], [0], [0], [1], [0, 0, 1, 1], [], []>} : vector<16x32xbf16>, vector<32x32xbf16>, vector<16x32xf32> -> vector<16x32xf32>
    %c0_21 = arith.constant 0 : index
    %c0_22 = arith.constant 0 : index
    %20 = vector.load %arg9[%c0_21, %c0_22] : memref<1x32xf32, #tpu.memory_space<vmem>>, vector<1x32xf32>
    %21 = vector.broadcast %20 : vector<1x32xf32> to vector<16x32xf32>
    %22 = arith.addf %19, %21 : vector<16x32xf32>
    %c0_23 = arith.constant 0 : index
    %c0_24 = arith.constant 0 : index
    %23 = vector.load %arg12[%c0_23, %c0_24] : memref<16x32xf32, #tpu.memory_space<vmem>>, vector<16x32xf32>
    tpu.vector_store %arg12[%c0_23, %c0_24], %22 {strides = array<i32>} : memref<16x32xf32, #tpu.memory_space<vmem>>, vector<16x32xf32>,
    return
  }
  func.func @transform_0(%arg0: i32) -> (i32, i32) {
    %c0_i32 = arith.constant 0 : i32
    %c0_i32_0 = arith.constant 0 : i32
    return %arg0, %c0_i32 : i32, i32
  }
  func.func @transform_1(%arg0: i32) -> (i32, i32) {
    %c0_i32 = arith.constant 0 : i32
    %c0_i32_0 = arith.constant 0 : i32
    return %arg0, %c0_i32 : i32, i32
  }
  func.func @transform_2(%arg0: i32) -> (i32, i32) {
    %c0_i32 = arith.constant 0 : i32
    %c0_i32_0 = arith.constant 0 : i32
    return %arg0, %c0_i32 : i32, i32
  }
  func.func @transform_3(%arg0: i32) -> (i32, i32) {
    %c0_i32 = arith.constant 0 : i32
    %c0_i32_0 = arith.constant 0 : i32
    %c0_i32_1 = arith.constant 0 : i32
    return %c0_i32, %c0_i32_0 : i32, i32
  }
  func.func @transform_4(%arg0: i32) -> (i32, i32) {
    %c0_i32 = arith.constant 0 : i32
    %c0_i32_0 = arith.constant 0 : i32
    %c0_i32_1 = arith.constant 0 : i32
    return %c0_i32, %c0_i32_0 : i32, i32
  }
  func.func @transform_5(%arg0: i32) -> (i32, i32) {
    %c0_i32 = arith.constant 0 : i32
    %c0_i32_0 = arith.constant 0 : i32
    %c0_i32_1 = arith.constant 0 : i32
    return %c0_i32, %c0_i32_0 : i32, i32
  }
  func.func @transform_6(%arg0: i32) -> (i32, i32) {
    %c0_i32 = arith.constant 0 : i32
    %c0_i32_0 = arith.constant 0 : i32
    %c0_i32_1 = arith.constant 0 : i32
    return %c0_i32, %c0_i32_0 : i32, i32
  }
  func.func @transform_7(%arg0: i32) -> (i32, i32) {
    %c0_i32 = arith.constant 0 : i32
    %c0_i32_0 = arith.constant 0 : i32
    %c0_i32_1 = arith.constant 0 : i32
    return %c0_i32, %c0_i32_0 : i32, i32
  }
  func.func @transform_8(%arg0: i32) -> (i32, i32) {
    %c0_i32 = arith.constant 0 : i32
    %c0_i32_0 = arith.constant 0 : i32
    %c0_i32_1 = arith.constant 0 : i32
    return %c0_i32, %c0_i32_0 : i32, i32
  }
  func.func @transform_9(%arg0: i32) -> (i32, i32) {
    %c0_i32 = arith.constant 0 : i32
    %c0_i32_0 = arith.constant 0 : i32
    return %arg0, %c0_i32 : i32, i32
  }
  func.func @transform_10(%arg0: i32) -> (i32, i32) {
    %c0_i32 = arith.constant 0 : i32
    %c0_i32_0 = arith.constant 0 : i32
    return %arg0, %c0_i32 : i32, i32
  }
  func.func @transform_11(%arg0: i32) -> (i32, i32) {
    %c0_i32 = arith.constant 0 : i32
    %c0_i32_0 = arith.constant 0 : i32
    return %arg0, %c0_i32 : i32, i32
  }
}

module attributes {stable_mosaic.version = 11 : i64} {
  func.func @_linear_kernel(%arg0: i32, %arg1: memref<16x32xf32, #tpu.memory_space<vmem>>, %arg2: memref<32x32xbf16, #tpu.memory_space<vmem>>, %arg3: memref<1x32xf32, #tpu.memory_space<vmem>>, %arg4: memref<16x32xf32, #tpu.memory_space<vmem>>) attributes {dimension_semantics = [#tpu.dimension_semantics<parallel>], iteration_bounds = array<i64: 1>, scalar_prefetch = 0 : i64, scratch_operands = 0 : i64, tpu.core_type = #tpu.core_type<tc>, window_params = [{transform_indices = @transform_0, window_bounds = array<i64: 16, 32>}, {pipeline_mode = #tpu.pipeline_mode<synchronous>, transform_indices = @transform_1, window_bounds = array<i64: 32, 32>}, {pipeline_mode = #tpu.pipeline_mode<synchronous>, transform_indices = @transform_2, window_bounds = array<i64: 1, 32>}, {transform_indices = @transform_3, window_bounds = array<i64: 16, 32>}]} {
    %c0 = arith.constant 0 : index
    %c0_0 = arith.constant 0 : index
    %0 = vector.load %arg1[%c0, %c0_0] : memref<16x32xf32, #tpu.memory_space<vmem>>, vector<16x32xf32>
    %1 = arith.truncf %0 : vector<16x32xf32> to vector<16x32xbf16>
    %c0_1 = arith.constant 0 : index
    %c0_2 = arith.constant 0 : index
    %2 = vector.load %arg2[%c0_1, %c0_2] : memref<32x32xbf16, #tpu.memory_space<vmem>>, vector<32x32xbf16>
    %cst = arith.constant dense<0.000000e+00> : vector<16x32xf32>
    %3 = tpu.matmul %1, %2, %cst {dimension_numbers = #tpu.dot_dimension_numbers<[1], [0], [0], [1], [0, 0, 1, 1], [], []>} : vector<16x32xbf16>, vector<32x32xbf16>, vector<16x32xf32> -> vector<16x32xf32>
    %c0_3 = arith.constant 0 : index
    %c0_4 = arith.constant 0 : index
    %4 = vector.load %arg3[%c0_3, %c0_4] : memref<1x32xf32, #tpu.memory_space<vmem>>, vector<1x32xf32>
    %5 = vector.broadcast %4 : vector<1x32xf32> to vector<16x32xf32>
    %6 = arith.addf %3, %5 : vector<16x32xf32>
    %c0_5 = arith.constant 0 : index
    %c0_6 = arith.constant 0 : index
    %7 = vector.load %arg4[%c0_5, %c0_6] : memref<16x32xf32, #tpu.memory_space<vmem>>, vector<16x32xf32>
    tpu.vector_store %arg4[%c0_5, %c0_6], %6 {strides = array<i32>} : memref<16x32xf32, #tpu.memory_space<vmem>>, vector<16x32xf32>,
    return
  }
  func.func @transform_0(%arg0: i32) -> (i32, i32) {
    %c0_i32 = arith.constant 0 : i32
    %c0_i32_0 = arith.constant 0 : i32
    return %arg0, %c0_i32 : i32, i32
  }
  func.func @transform_1(%arg0: i32) -> (i32, i32) {
    %c0_i32 = arith.constant 0 : i32
    %c0_i32_0 = arith.constant 0 : i32
    %c0_i32_1 = arith.constant 0 : i32
    return %c0_i32, %c0_i32_0 : i32, i32
  }
  func.func @transform_2(%arg0: i32) -> (i32, i32) {
    %c0_i32 = arith.constant 0 : i32
    %c0_i32_0 = arith.constant 0 : i32
    %c0_i32_1 = arith.constant 0 : i32
    return %c0_i32, %c0_i32_0 : i32, i32
  }
  func.func @transform_3(%arg0: i32) -> (i32, i32) {
    %c0_i32 = arith.constant 0 : i32
    %c0_i32_0 = arith.constant 0 : i32
    return %arg0, %c0_i32 : i32, i32
  }
}

module attributes {stable_mosaic.version = 11 : i64} {
  func.func @_attn_kernel(%arg0: i32, %arg1: i32, %arg2: memref<1x8x32xf32, #tpu.memory_space<vmem>>, %arg3: memref<1x8x32xf32, #tpu.memory_space<vmem>>, %arg4: memref<1x8x32xf32, #tpu.memory_space<vmem>>, %arg5: memref<1x8x8xi8, #tpu.memory_space<vmem>>, %arg6: memref<1x8x32xf32, #tpu.memory_space<vmem>>, %arg7: memref<1x4x8x8xf32, #tpu.memory_space<vmem>>) attributes {dimension_semantics = [#tpu.dimension_semantics<parallel>, #tpu.dimension_semantics<parallel>], iteration_bounds = array<i64: 2, 1>, scalar_prefetch = 0 : i64, scratch_operands = 0 : i64, tpu.core_type = #tpu.core_type<tc>, window_params = [{transform_indices = @transform_0, window_bounds = array<i64: 1, 8, 32>}, {transform_indices = @transform_1, window_bounds = array<i64: 1, 8, 32>}, {transform_indices = @transform_2, window_bounds = array<i64: 1, 8, 32>}, {transform_indices = @transform_3, window_bounds = array<i64: 1, 8, 8>}, {transform_indices = @transform_4, window_bounds = array<i64: 1, 8, 32>}, {transform_indices = @transform_5, window_bounds = array<i64: 1, 4, 8, 8>}]} {
    %c0 = arith.constant 0 : index
    %c0_0 = arith.constant 0 : index
    %c0_1 = arith.constant 0 : index
    %0 = vector.load %arg2[%c0, %c0_0, %c0_1] : memref<1x8x32xf32, #tpu.memory_space<vmem>>, vector<1x8x32xf32>
    %1 = vector.shape_cast %0 : vector<1x8x32xf32> to vector<8x32xf32>
    %cst = arith.constant 0.353553385 : f32
    %2 = vector.broadcast %cst : f32 to vector<8x32xf32>
    %3 = arith.mulf %1, %2 : vector<8x32xf32>
    %4 = arith.truncf %3 : vector<8x32xf32> to vector<8x32xbf16>
    %c0_2 = arith.constant 0 : index
    %c0_3 = arith.constant 0 : index
    %c0_4 = arith.constant 0 : index
    %5 = vector.load %arg3[%c0_2, %c0_3, %c0_4] : memref<1x8x32xf32, #tpu.memory_space<vmem>>, vector<1x8x32xf32>
    %6 = vector.shape_cast %5 : vector<1x8x32xf32> to vector<8x32xf32>
    %7 = arith.truncf %6 : vector<8x32xf32> to vector<8x32xbf16>
    %c0_5 = arith.constant 0 : index
    %c0_6 = arith.constant 0 : index
    %c0_7 = arith.constant 0 : index
    %8 = vector.load %arg4[%c0_5, %c0_6, %c0_7] : memref<1x8x32xf32, #tpu.memory_space<vmem>>, vector<1x8x32xf32>
    %9 = vector.shape_cast %8 : vector<1x8x32xf32> to vector<8x32xf32>
    %10 = arith.truncf %9 : vector<8x32xf32> to vector<8x32xbf16>
    %c0_8 = arith.constant 0 : index
    %c0_9 = arith.constant 0 : index
    %c0_10 = arith.constant 0 : index
    %11 = vector.load %arg5[%c0_8, %c0_9, %c0_10] : memref<1x8x8xi8, #tpu.memory_space<vmem>>, vector<1x8x8xi8>
    %12 = vector.shape_cast %11 : vector<1x8x8xi8> to vector<8x8xi8>
    %c0_i8 = arith.constant 0 : i8
    %13 = vector.broadcast %c0_i8 : i8 to vector<8x8xi8>
    %14 = arith.cmpi ne, %12, %13 : vector<8x8xi8>
    %15 = vector.extract_strided_slice %4 {offsets = [0, 0], sizes = [8, 8], strides = [1, 1]} : vector<8x32xbf16> to vector<8x8xbf16>
    %16 = vector.extract_strided_slice %7 {offsets = [0, 0], sizes = [8, 8], strides = [1, 1]} : vector<8x32xbf16> to vector<8x8xbf16>
    %cst_11 = arith.constant dense<0.000000e+00> : vector<8x8xf32>
    %17 = tpu.matmul %15, %16, %cst_11 {dimension_numbers = #tpu.dot_dimension_numbers<[1], [1], [0], [0], [0, 0, 1, 0], [], []>} : vector<8x8xbf16>, vector<8x8xbf16>, vector<8x8xf32> -> vector<8x8xf32>
    %cst_12 = arith.constant -9.99999984E+17 : f32
    %18 = vector.broadcast %cst_12 : f32 to vector<8x8xf32>
    %19 = arith.select %14, %18, %17 : vector<8x8xi1>, vector<8x8xf32>
    %cst_13 = arith.constant dense<0xFF800000> : vector<8xf32>
    %20 = vector.multi_reduction <maximumf>, %19, %cst_13 [1] : vector<8x8xf32> to vector<8xf32>
    %21 = vector.shape_cast %20 : vector<8xf32> to vector<8x1xf32>
    %22 = vector.broadcast %21 : vector<8x1xf32> to vector<8x8xf32>
    %23 = arith.subf %19, %22 : vector<8x8xf32>
    %24 = math.exp %23 : vector<8x8xf32>
    %cst_14 = arith.constant dense<0.000000e+00> : vector<8xf32>
    %25 = vector.multi_reduction <add>, %24, %cst_14 [1] : vector<8x8xf32> to vector<8xf32>
    %26 = vector.shape_cast %25 : vector<8xf32> to vector<8x1xf32>
    %27 = tpu.reciprocal %26 {approx = true} : vector<8x1xf32> -> vector<8x1xf32>
    %28 = vector.broadcast %27 : vector<8x1xf32> to vector<8x8xf32>
    %29 = arith.mulf %24, %28 : vector<8x8xf32>
    %c0_15 = arith.constant 0 : index
    %c0_16 = arith.constant 0 : index
    %c0_17 = arith.constant 0 : index
    %c0_18 = arith.constant 0 : index
    %30 = vector.load %arg7[%c0_15, %c0_16, %c0_17, %c0_18] : memref<1x4x8x8xf32, #tpu.memory_space<vmem>>, vector<1x1x8x8xf32>
    %31 = vector.shape_cast %30 : vector<1x1x8x8xf32> to vector<8x8xf32>
    %32 = vector.shape_cast %29 : vector<8x8xf32> to vector<1x1x8x8xf32>
    tpu.vector_store %arg7[%c0_15, %c0_16, %c0_17, %c0_18], %32 {strides = array<i32>} : memref<1x4x8x8xf32, #tpu.memory_space<vmem>>, vector<1x1x8x8xf32>,
    %33 = arith.truncf %29 : vector<8x8xf32> to vector<8x8xbf16>
    %34 = vector.extract_strided_slice %10 {offsets = [0, 0], sizes = [8, 8], strides = [1, 1]} : vector<8x32xbf16> to vector<8x8xbf16>
    %cst_19 = arith.constant dense<0.000000e+00> : vector<8x8xf32>
    %35 = tpu.matmul %33, %34, %cst_19 {dimension_numbers = #tpu.dot_dimension_numbers<[1], [0], [0], [1], [0, 0, 1, 1], [], []>} : vector<8x8xbf16>, vector<8x8xbf16>, vector<8x8xf32> -> vector<8x8xf32>
    %c0_20 = arith.constant 0 : index
    %c0_21 = arith.constant 0 : index
    %c0_22 = arith.constant 0 : index
    %36 = vector.load %arg6[%c0_20, %c0_21, %c0_22] : memref<1x8x32xf32, #tpu.memory_space<vmem>>, vector<1x8x8xf32>
    %37 = vector.shape_cast %36 : vector<1x8x8xf32> to vector<8x8xf32>
    %38 = vector.shape_cast %35 : vector<8x8xf32> to vector<1x8x8xf32>
    tpu.vector_store %arg6[%c0_20, %c0_21, %c0_22], %38 {strides = array<i32>} : memref<1x8x32xf32, #tpu.memory_space<vmem>>, vector<1x8x8xf32>,
    %39 = vector.extract_strided_slice %4 {offsets = [0, 8], sizes = [8, 8], strides = [1, 1]} : vector<8x32xbf16> to vector<8x8xbf16>
    %40 = vector.extract_strided_slice %7 {offsets = [0, 8], sizes = [8, 8], strides = [1, 1]} : vector<8x32xbf16> to vector<8x8xbf16>
    %cst_23 = arith.constant dense<0.000000e+00> : vector<8x8xf32>
    %41 = tpu.matmul %39, %40, %cst_23 {dimension_numbers = #tpu.dot_dimension_numbers<[1], [1], [0], [0], [0, 0, 1, 0], [], []>} : vector<8x8xbf16>, vector<8x8xbf16>, vector<8x8xf32> -> vector<8x8xf32>
    %cst_24 = arith.constant -9.99999984E+17 : f32
    %42 = vector.broadcast %cst_24 : f32 to vector<8x8xf32>
    %43 = arith.select %14, %42, %41 : vector<8x8xi1>, vector<8x8xf32>
    %cst_25 = arith.constant dense<0xFF800000> : vector<8xf32>
    %44 = vector.multi_reduction <maximumf>, %43, %cst_25 [1] : vector<8x8xf32> to vector<8xf32>
    %45 = vector.shape_cast %44 : vector<8xf32> to vector<8x1xf32>
    %46 = vector.broadcast %45 : vector<8x1xf32> to vector<8x8xf32>
    %47 = arith.subf %43, %46 : vector<8x8xf32>
    %48 = math.exp %47 : vector<8x8xf32>
    %cst_26 = arith.constant dense<0.000000e+00> : vector<8xf32>
    %49 = vector.multi_reduction <add>, %48, %cst_26 [1] : vector<8x8xf32> to vector<8xf32>
    %50 = vector.shape_cast %49 : vector<8xf32> to vector<8x1xf32>
    %51 = tpu.reciprocal %50 {approx = true} : vector<8x1xf32> -> vector<8x1xf32>
    %52 = vector.broadcast %51 : vector<8x1xf32> to vector<8x8xf32>
    %53 = arith.mulf %48, %52 : vector<8x8xf32>
    %c0_27 = arith.constant 0 : index
    %c1 = arith.constant 1 : index
    %c0_28 = arith.constant 0 : index
    %c0_29 = arith.constant 0 : index
    %54 = vector.load %arg7[%c0_27, %c1, %c0_28, %c0_29] : memref<1x4x8x8xf32, #tpu.memory_space<vmem>>, vector<1x1x8x8xf32>
    %55 = vector.shape_cast %54 : vector<1x1x8x8xf32> to vector<8x8xf32>
    %56 = vector.shape_cast %53 : vector<8x8xf32> to vector<1x1x8x8xf32>
    tpu.vector_store %arg7[%c0_27, %c1, %c0_28, %c0_29], %56 {strides = array<i32>} : memref<1x4x8x8xf32, #tpu.memory_space<vmem>>, vector<1x1x8x8xf32>,
    %57 = arith.truncf %53 : vector<8x8xf32> to vector<8x8xbf16>
    %58 = vector.extract_strided_slice %10 {offsets = [0, 8], sizes = [8, 8], strides = [1, 1]} : vector<8x32xbf16> to vector<8x8xbf16>
    %cst_30 = arith.constant dense<0.000000e+00> : vector<8x8xf32>
    %59 = tpu.matmul %57, %58, %cst_30 {dimension_numbers = #tpu.dot_dimension_numbers<[1], [0], [0], [1], [0, 0, 1, 1], [], []>} : vector<8x8xbf16>, vector<8x8xbf16>, vector<8x8xf32> -> vector<8x8xf32>
    %c0_31 = arith.constant 0 : index
    %c0_32 = arith.constant 0 : index
    %c8 = arith.constant 8 : index
    %60 = vector.load %arg6[%c0_31, %c0_32, %c8] : memref<1x8x32xf32, #tpu.memory_space<vmem>>, vector<1x8x8xf32>
    %61 = vector.shape_cast %60 : vector<1x8x8xf32> to vector<8x8xf32>
    %62 = vector.shape_cast %59 : vector<8x8xf32> to vector<1x8x8xf32>
    tpu.vector_store %arg6[%c0_31, %c0_32, %c8], %62 {strides = array<i32>} : memref<1x8x32xf32, #tpu.memory_space<vmem>>, vector<1x8x8xf32>,
    %63 = vector.extract_strided_slice %4 {offsets = [0, 16], sizes = [8, 8], strides = [1, 1]} : vector<8x32xbf16> to vector<8x8xbf16>
    %64 = vector.extract_strided_slice %7 {offsets = [0, 16], sizes = [8, 8], strides = [1, 1]} : vector<8x32xbf16> to vector<8x8xbf16>
    %cst_33 = arith.constant dense<0.000000e+00> : vector<8x8xf32>
    %65 = tpu.matmul %63, %64, %cst_33 {dimension_numbers = #tpu.dot_dimension_numbers<[1], [1], [0], [0], [0, 0, 1, 0], [], []>} : vector<8x8xbf16>, vector<8x8xbf16>, vector<8x8xf32> -> vector<8x8xf32>
    %cst_34 = arith.constant -9.99999984E+17 : f32
    %66 = vector.broadcast %cst_34 : f32 to vector<8x8xf32>
    %67 = arith.select %14, %66, %65 : vector<8x8xi1>, vector<8x8xf32>
    %cst_35 = arith.constant dense<0xFF800000> : vector<8xf32>
    %68 = vector.multi_reduction <maximumf>, %67, %cst_35 [1] : vector<8x8xf32> to vector<8xf32>
    %69 = vector.shape_cast %68 : vector<8xf32> to vector<8x1xf32>
    %70 = vector.broadcast %69 : vector<8x1xf32> to vector<8x8xf32>
    %71 = arith.subf %67, %70 : vector<8x8xf32>
    %72 = math.exp %71 : vector<8x8xf32>
    %cst_36 = arith.constant dense<0.000000e+00> : vector<8xf32>
    %73 = vector.multi_reduction <add>, %72, %cst_36 [1] : vector<8x8xf32> to vector<8xf32>
    %74 = vector.shape_cast %73 : vector<8xf32> to vector<8x1xf32>
    %75 = tpu.reciprocal %74 {approx = true} : vector<8x1xf32> -> vector<8x1xf32>
    %76 = vector.broadcast %75 : vector<8x1xf32> to vector<8x8xf32>
    %77 = arith.mulf %72, %76 : vector<8x8xf32>
    %c0_37 = arith.constant 0 : index
    %c2 = arith.constant 2 : index
    %c0_38 = arith.constant 0 : index
    %c0_39 = arith.constant 0 : index
    %78 = vector.load %arg7[%c0_37, %c2, %c0_38, %c0_39] : memref<1x4x8x8xf32, #tpu.memory_space<vmem>>, vector<1x1x8x8xf32>
    %79 = vector.shape_cast %78 : vector<1x1x8x8xf32> to vector<8x8xf32>
    %80 = vector.shape_cast %77 : vector<8x8xf32> to vector<1x1x8x8xf32>
    tpu.vector_store %arg7[%c0_37, %c2, %c0_38, %c0_39], %80 {strides = array<i32>} : memref<1x4x8x8xf32, #tpu.memory_space<vmem>>, vector<1x1x8x8xf32>,
    %81 = arith.truncf %77 : vector<8x8xf32> to vector<8x8xbf16>
    %82 = vector.extract_strided_slice %10 {offsets = [0, 16], sizes = [8, 8], strides = [1, 1]} : vector<8x32xbf16> to vector<8x8xbf16>
    %cst_40 = arith.constant dense<0.000000e+00> : vector<8x8xf32>
    %83 = tpu.matmul %81, %82, %cst_40 {dimension_numbers = #tpu.dot_dimension_numbers<[1], [0], [0], [1], [0, 0, 1, 1], [], []>} : vector<8x8xbf16>, vector<8x8xbf16>, vector<8x8xf32> -> vector<8x8xf32>
    %c0_41 = arith.constant 0 : index
    %c0_42 = arith.constant 0 : index
    %c16 = arith.constant 16 : index
    %84 = vector.load %arg6[%c0_41, %c0_42, %c16] : memref<1x8x32xf32, #tpu.memory_space<vmem>>, vector<1x8x8xf32>
    %85 = vector.shape_cast %84 : vector<1x8x8xf32> to vector<8x8xf32>
    %86 = vector.shape_cast %83 : vector<8x8xf32> to vector<1x8x8xf32>
    tpu.vector_store %arg6[%c0_41, %c0_42, %c16], %86 {strides = array<i32>} : memref<1x8x32xf32, #tpu.memory_space<vmem>>, vector<1x8x8xf32>,
    %87 = vector.extract_strided_slice %4 {offsets = [0, 24], sizes = [8, 8], strides = [1, 1]} : vector<8x32xbf16> to vector<8x8xbf16>
    %88 = vector.extract_strided_slice %7 {offsets = [0, 24], sizes = [8, 8], strides = [1, 1]} : vector<8x32xbf16> to vector<8x8xbf16>
    %cst_43 = arith.constant dense<0.000000e+00> : vector<8x8xf32>
    %89 = tpu.matmul %87, %88, %cst_43 {dimension_numbers = #tpu.dot_dimension_numbers<[1], [1], [0], [0], [0, 0, 1, 0], [], []>} : vector<8x8xbf16>, vector<8x8xbf16>, vector<8x8xf32> -> vector<8x8xf32>
    %cst_44 = arith.constant -9.99999984E+17 : f32
    %90 = vector.broadcast %cst_44 : f32 to vector<8x8xf32>
    %91 = arith.select %14, %90, %89 : vector<8x8xi1>, vector<8x8xf32>
    %cst_45 = arith.constant dense<0xFF800000> : vector<8xf32>
    %92 = vector.multi_reduction <maximumf>, %91, %cst_45 [1] : vector<8x8xf32> to vector<8xf32>
    %93 = vector.shape_cast %92 : vector<8xf32> to vector<8x1xf32>
    %94 = vector.broadcast %93 : vector<8x1xf32> to vector<8x8xf32>
    %95 = arith.subf %91, %94 : vector<8x8xf32>
    %96 = math.exp %95 : vector<8x8xf32>
    %cst_46 = arith.constant dense<0.000000e+00> : vector<8xf32>
    %97 = vector.multi_reduction <add>, %96, %cst_46 [1] : vector<8x8xf32> to vector<8xf32>
    %98 = vector.shape_cast %97 : vector<8xf32> to vector<8x1xf32>
    %99 = tpu.reciprocal %98 {approx = true} : vector<8x1xf32> -> vector<8x1xf32>
    %100 = vector.broadcast %99 : vector<8x1xf32> to vector<8x8xf32>
    %101 = arith.mulf %96, %100 : vector<8x8xf32>
    %c0_47 = arith.constant 0 : index
    %c3 = arith.constant 3 : index
    %c0_48 = arith.constant 0 : index
    %c0_49 = arith.constant 0 : index
    %102 = vector.load %arg7[%c0_47, %c3, %c0_48, %c0_49] : memref<1x4x8x8xf32, #tpu.memory_space<vmem>>, vector<1x1x8x8xf32>
    %103 = vector.shape_cast %102 : vector<1x1x8x8xf32> to vector<8x8xf32>
    %104 = vector.shape_cast %101 : vector<8x8xf32> to vector<1x1x8x8xf32>
    tpu.vector_store %arg7[%c0_47, %c3, %c0_48, %c0_49], %104 {strides = array<i32>} : memref<1x4x8x8xf32, #tpu.memory_space<vmem>>, vector<1x1x8x8xf32>,
    %105 = arith.truncf %101 : vector<8x8xf32> to vector<8x8xbf16>
    %106 = vector.extract_strided_slice %10 {offsets = [0, 24], sizes = [8, 8], strides = [1, 1]} : vector<8x32xbf16> to vector<8x8xbf16>
    %cst_50 = arith.constant dense<0.000000e+00> : vector<8x8xf32>
    %107 = tpu.matmul %105, %106, %cst_50 {dimension_numbers = #tpu.dot_dimension_numbers<[1], [0], [0], [1], [0, 0, 1, 1], [], []>} : vector<8x8xbf16>, vector<8x8xbf16>, vector<8x8xf32> -> vector<8x8xf32>
    %c0_51 = arith.constant 0 : index
    %c0_52 = arith.constant 0 : index
    %c24 = arith.constant 24 : index
    %108 = vector.load %arg6[%c0_51, %c0_52, %c24] : memref<1x8x32xf32, #tpu.memory_space<vmem>>, vector<1x8x8xf32>
    %109 = vector.shape_cast %108 : vector<1x8x8xf32> to vector<8x8xf32>
    %110 = vector.shape_cast %107 : vector<8x8xf32> to vector<1x8x8xf32>
    tpu.vector_store %arg6[%c0_51, %c0_52, %c24], %110 {strides = array<i32>} : memref<1x8x32xf32, #tpu.memory_space<vmem>>, vector<1x8x8xf32>,
    return
  }
  func.func @transform_0(%arg0: i32, %arg1: i32) -> (i32, i32, i32) {
    %c0_i32 = arith.constant 0 : i32
    %c0_i32_0 = arith.constant 0 : i32
    return %arg0, %arg1, %c0_i32 : i32, i32, i32
  }
  func.func @transform_1(%arg0: i32, %arg1: i32) -> (i32, i32, i32) {
    %c0_i32 = arith.constant 0 : i32
    %c0_i32_0 = arith.constant 0 : i32
    %c0_i32_1 = arith.constant 0 : i32
    return %arg0, %c0_i32, %c0_i32_0 : i32, i32, i32
  }
  func.func @transform_2(%arg0: i32, %arg1: i32) -> (i32, i32, i32) {
    %c0_i32 = arith.constant 0 : i32
    %c0_i32_0 = arith.constant 0 : i32
    %c0_i32_1 = arith.constant 0 : i32
    return %arg0, %c0_i32, %c0_i32_0 : i32, i32, i32
  }
  func.func @transform_3(%arg0: i32, %arg1: i32) -> (i32, i32, i32) {
    %c0_i32 = arith.constant 0 : i32
    %c0_i32_0 = arith.constant 0 : i32
    return %arg0, %arg1, %c0_i32 : i32, i32, i32
  }
  func.func @transform_4(%arg0: i32, %arg1: i32) -> (i32, i32, i32) {
    %c0_i32 = arith.constant 0 : i32
    %c0_i32_0 = arith.constant 0 : i32
    return %arg0, %arg1, %c0_i32 : i32, i32, i32
  }
  func.func @transform_5(%arg0: i32, %arg1: i32) -> (i32, i32, i32, i32) {
    %c0_i32 = arith.constant 0 : i32
    %c0_i32_0 = arith.constant 0 : i32
    %c0_i32_1 = arith.constant 0 : i32
    return %arg0, %c0_i32, %arg1, %c0_i32_0 : i32, i32, i32, i32
  }
}

</mosaic_0001>

<bundles_post_ra>
// kernel: _lambda_.5
= control target key start
LH: loop header
LB: loop body
LE: loop exit
PB: predicated region body
PF: predicated region fallthrough
CT: control target
= control target key end

     0   :  { %v149_v1 = vmov 0.0   ;;  %vm150_vm0 = vmmov 0   ;;  %s192_s0 = inlined_call_operand.vmem [shape: f32[16,32], index: 0, kind: input, shape index: {}]   ;;  %s193_s1 = inlined_call_operand.vmem [shape: bf16[32,32], index: 1, kind: input, shape index: {}]   ;;  %s194_s2 = inlined_call_operand.vmem [shape: f32[1,32], index: 2, kind: input, shape index: {}]   ;;  %s195_s3 = inlined_call_operand.hbm [shape: f32[16,32], index: 3, kind: output, shape index: {}]  }
   0x1   :  { %v125_v0 = vld [vmem:[%s193_s1 + $0x8] sm:$0xff]   ;;  %112 = vmatprep.subr.bf16.mxu0 %v149_v1  ;;  %v126_v2 = vld [vmem:[%s193_s1] sm:$0xff]   ;;  %116 = vmatprep.mubr.msk.bf16.mxu0 %vm150_vm0, %v149_v1 }
   0x2   :  { %113 = vmatpush3.bf16.msra.mxu0 %v125_v0  ;;  %v16_v3 = vld [vmem:[%s192_s0] sm:$0xff]  ;;  %v17_v4 = vld [vmem:[%s192_s0 + $0x8] sm:$0xff] }
   0x3   :  { %114 = vmatprep.subr.bf16.mxu0 %v149_v1 }
   0x4   :  { %8 = vsyncpa [#allocation3], 0  ;;  %v18_v5 = vpack.c.bf16 %v17_v4, %v16_v3  ;;  %vm42_vm1 = vcmask 261120   ;;  %v105_v6 = vld [vmem:[%s194_s2] ss:$0 sm:$0xff]  ;;  %s151_s1 = smov [#allocation2]  }
   0x5   :  { %s94_s22 = sshll.u32 %s151_s1, 4  ;;  %s95_s22 = int_to_ptr.vmem [resolvable:$true] %s94_s22 }
   0x6   :  { %115 = vmatpush3.bf16.msra.mxu0 %v126_v2  ;;  %s127_s0 = scalar_lea.vmem %s95_s22, 256  ;;  %p132_p1 = scmp.lt.s32.totalorder %s95_s22, %s95_s22 }
   0x7   :  { %p128_p0 = scmp.ne.s32.totalorder %s95_s22, %s127_s0  ;;  %p133_p2 = scmp.lt.s32.totalorder %s127_s0, %s127_s0 }
   0x9   :  { %117 = vmatmul.mubr.msk.bf16.vlgmr.msra.gmra.mxu0 %vm42_vm1, %v18_v5  ;;  %p134_p3 = por %p133_p2, %p132_p1 }
   0xb   :  { %p135_p4 = pnand %p134_p3, %p128_p0 }
  0xc9   :  { %v80_v7 = vpop.f32.mrf.mxu0 }
  0xca   :  { %v81_v8 = vadd.f32 %v105_v6, %v80_v7 }
  0xcb   :  { %v118_v9 = vpop.f32.mrf.mxu0 }
  0xcc   :  { %87 = vst.msk [vmem:[#allocation2] sm:$0xff] %vm42_vm1, %v81_v8 }
  0xcd   :  { %v83_v10 = vpop.f32.mrf.mxu0 }
  0xce   :  { %v84_v11 = vadd.f32 %v105_v6, %v83_v10 }
  0xcf   :  { %v119_v12 = vpop.f32.mrf.mxu0 }
  0xd0   :  { %88 = vst.msk [vmem:[#allocation2 + $0x8] sm:$0xff] %vm42_vm1, %v84_v11 }
  0xd1   :  { %138 = shalt.err (!%p135_p4)
}
  0xd2   :  { %s152_s23 = smov 128   ;;  %s153_s2 = smov 8  }
  0xd3   :  { %100 = dma.vmem_to_hbm [thread:$0]  %s95_s22, 256, %s195_s3, [#allocation3], %s152_s23, %s152_s23, %s153_s2  }
  0xd4   :  { %147 = dma.done.wait [#allocation3], 256  }
  0xd5   :  { %148 = vsyncadd [#allocation3], 4294967040 }
  0xd6   :  { %104 = vsyncpa [#allocation3], 1 }

// kernel: _lambda_.3
= control target key start
LH: loop header
LB: loop body
LE: loop exit
PB: predicated region body
PF: predicated region fallthrough
CT: control target
= control target key end

     0   :  { %v318_v0 = vmov 0.0   ;;  %vm319_vm0 = vmmov 0   ;;  %vm62_vm1 = vcmask 261120   ;;  %s455_s3 = inlined_call_operand.vmem [shape: bf16[32,32], index: 3, kind: input, shape index: {}]   ;;  %s456_s4 = inlined_call_operand.vmem [shape: bf16[32,32], index: 4, kind: input, shape index: {}]   ;;  %s457_s0 = inlined_call_operand.vmem [shape: f32[16,32], index: 0, kind: input, shape index: {}]   ;;  %s458_s5 = inlined_call_operand.vmem [shape: bf16[32,32], index: 5, kind: input, shape index: {}]   ;;  %s459_s1 = inlined_call_operand.vmem [shape: f32[16,32], index: 1, kind: input, shape index: {}]   ;;  %s460_s2 = inlined_call_operand.vmem [shape: f32[16,32], index: 2, kind: input, shape index: {}]   ;;  %s461_s6 = inlined_call_operand.vmem [shape: f32[1,32], index: 6, kind: input, shape index: {}]   ;;  %s462_s7 = inlined_call_operand.vmem [shape: f32[1,32], index: 7, kind: input, shape index: {}]   ;;  %s463_s9 = inlined_call_operand.vmem [shape: f32[16,32], index: 9, kind: output, shape index: {0}]   ;;  %s464_s10 = inlined_call_operand.vmem [shape: f32[16,32], index: 10, kind: output, shape index: {1}]   ;;  %s465_s8 = inlined_call_operand.vmem [shape: f32[1,32], index: 8, kind: input, shape index: {}]   ;;  %s466_s11 = inlined_call_operand.vmem [shape: f32[16,32], index: 11, kind: output, shape index: {2}]  }
   0x1   :  { %286 = vmatprep.subr.bf16.mxu0 %v318_v0  ;;  %v312_v1 = vld [vmem:[%s455_s3 + $0x8] sm:$0xff]   ;;  %294 = vmatprep.subr.bf16.mxu1 %v318_v0  ;;  %v314_v3 = vld [vmem:[%s455_s3] sm:$0xff]  }
   0x2   :  { %v313_v2 = vld [vmem:[%s456_s4 + $0x8] sm:$0xff]   ;;  %290 = vmatprep.mubr.msk.bf16.mxu0 %vm319_vm0, %v318_v0  ;;  %298 = vmatprep.mubr.msk.bf16.mxu1 %vm319_vm0, %v318_v0  ;;  %v36_v4 = vld [vmem:[%s457_s0] sm:$0xff] }
   0x3   :  { %287 = vmatpush3.bf16.msra.mxu0 %v312_v1  ;;  %295 = vmatpush3.bf16.msra.mxu1 %v313_v2  ;;  %v37_v5 = vld [vmem:[%s457_s0 + $0x8] sm:$0xff]  ;;  %v315_v6 = vld [vmem:[%s456_s4] sm:$0xff]  }
   0x4   :  { %288 = vmatprep.subr.bf16.mxu0 %v318_v0  ;;  %296 = vmatprep.subr.bf16.mxu1 %v318_v0  ;;  %v38_v7 = vpack.c.bf16 %v37_v5, %v36_v4  ;;  %v316_v8 = vld [vmem:[%s458_s5 + $0x8] sm:$0xff]   ;;  %v109_v9 = vld [vmem:[%s459_s1] sm:$0xff] }
   0x5   :  { %v110_v10 = vld [vmem:[%s459_s1 + $0x8] sm:$0xff]  ;;  %v317_v12 = vld [vmem:[%s458_s5] sm:$0xff]  }
   0x6   :  { %v111_v11 = vpack.c.bf16 %v110_v10, %v109_v9  ;;  %v181_v13 = vld [vmem:[%s460_s2] sm:$0xff]  ;;  %v182_v14 = vld [vmem:[%s460_s2 + $0x8] sm:$0xff] }
   0x7   :  { %289 = vmatpush3.bf16.msra.mxu0 %v314_v3  ;;  %297 = vmatpush3.bf16.msra.mxu1 %v315_v6  ;;  %v183_v15 = vpack.c.bf16 %v182_v14, %v181_v13  ;;  %v265_v16 = vld [vmem:[%s461_s6] ss:$0 sm:$0xff] }
   0x8   :  { %302 = vmatprep.subr.bf16.mxu0 %v318_v0  ;;  %v269_v17 = vld [vmem:[%s462_s7] ss:$0 sm:$0xff] }
   0x9   :  { %v273_v29 = vld [vmem:[%s465_s8] ss:$0 sm:$0xff] }
   0xa   :  { %291 = vmatmul.mubr.msk.bf16.vlgmr.msra.gmra.mxu0 %vm62_vm1, %v38_v7  ;;  %299 = vmatmul.mubr.msk.bf16.vlgmr.msra.gmra.mxu1 %vm62_vm1, %v111_v11 }
   0xb   :  { %303 = vmatpush3.bf16.msra.mxu0 %v316_v8  ;;  %306 = vmatprep.mubr.msk.bf16.mxu0 %vm319_vm0, %v318_v0 }
   0xc   :  { %304 = vmatprep.subr.bf16.mxu0 %v318_v0 }
   0xf   :  { %305 = vmatpush3.bf16.msra.mxu0 %v317_v12 }
  0x12   :  { %307 = vmatmul.mubr.msk.bf16.vlgmr.msra.gmra.mxu0 %vm62_vm1, %v183_v15 }
  0xca   :  { %v100_v18 = vpop.f32.mrf.mxu0  ;;  %v172_v20 = vpop.f32.mrf.mxu1 }
  0xcb   :  { %v101_v19 = vadd.f32 %v265_v16, %v100_v18  ;;  %v173_v22 = vadd.f32 %v269_v17, %v172_v20 }
  0xcc   :  { %v292_v21 = vpop.f32.mrf.mxu0  ;;  %v300_v23 = vpop.f32.mrf.mxu1 }
  0xcd   :  { %107 = vst.msk [vmem:[%s463_s9] sm:$0xff] %vm62_vm1, %v101_v19  ;;  %179 = vst.msk [vmem:[%s464_s10] sm:$0xff] %vm62_vm1, %v173_v22 }
  0xce   :  { %v103_v24 = vpop.f32.mrf.mxu0  ;;  %v175_v26 = vpop.f32.mrf.mxu1 }
  0xcf   :  { %v104_v25 = vadd.f32 %v265_v16, %v103_v24  ;;  %v176_v28 = vadd.f32 %v269_v17, %v175_v26 }
  0xd0   :  { %v293_v27 = vpop.f32.mrf.mxu0  ;;  %v301_v30 = vpop.f32.mrf.mxu1 }
  0xd1   :  { %108 = vst.msk [vmem:[%s463_s9 + $0x8] sm:$0xff] %vm62_vm1, %v104_v25  ;;  %180 = vst.msk [vmem:[%s464_s10 + $0x8] sm:$0xff] %vm62_vm1, %v176_v28 }
  0xd2   :  { %v244_v31 = vpop.f32.mrf.mxu0 }
  0xd3   :  { %v245_v32 = vadd.f32 %v273_v29, %v244_v31 }
  0xd4   :  { %v308_v33 = vpop.f32.mrf.mxu0 }
  0xd5   :  { %251 = vst.msk [vmem:[%s466_s11] sm:$0xff] %vm62_vm1, %v245_v32 }
  0xd6   :  { %v247_v34 = vpop.f32.mrf.mxu0 }
  0xd7   :  { %v248_v35 = vadd.f32 %v273_v29, %v247_v34 }
  0xd8   :  { %v309_v36 = vpop.f32.mrf.mxu0 }
  0xd9   :  { %252 = vst.msk [vmem:[%s466_s11 + $0x8] sm:$0xff] %vm62_vm1, %v248_v35 }

// kernel: _lambda_.4
= control target key start
LH: loop header
LB: loop body
LE: loop exit
PB: predicated region body
PF: predicated region fallthrough
CT: control target
= control target key end

     0   :  { %11 = vsyncpa [#allocation3], 0  ;;  %s1503_s0 = inlined_call_operand.vmem [shape: f32[2,8,32], index: 0, kind: input, shape index: {}]   ;;  %s1504_s1 = inlined_call_operand.vmem [shape: f32[2,8,32], index: 1, kind: input, shape index: {}]   ;;  %s1505_s2 = inlined_call_operand.vmem [shape: f32[2,8,32], index: 2, kind: input, shape index: {}]   ;;  %s1506_s3 = inlined_call_operand.vmem [shape: s8[2,8,8], index: 3, kind: input, shape index: {}]   ;;  %s1507_s4 = inlined_call_operand.vmem [shape: f32[2,8,32], index: 4, kind: output, shape index: {0}]   ;;  %s1508_s5 = inlined_call_operand.hbm [shape: f32[2,4,8,8], index: 5, kind: output, shape index: {1}]  }
   0x1   :  { %13 = vsyncpa [#allocation3 + $0x1], 0  ;;  %s1272_s18 = smov 0   ;;  %s1274_s19 = smov 0  }
   0x2   :  { %s1276_s20 = smov 0   ;;  %s1278_s21 = smov 0  }
   0x3   :  { %s1280_s22 = smov 0   ;;  %s1282_s23 = smov 0  }
   0x4 LB: > { %s980_s24 = sadd.s32 4294967295, %s1229_s23   ;;  %s981_s25 = sadd.s32 4294967294, %s1229_s23   ;;  %s1229_s23 = sphi %s1282_s23, %s19_s23   ;;  %s1225_s22 = sphi %s1280_s22, %s1517_s22   ;;  %s1221_s21 = sphi %s1278_s21, %s1516_s21   ;;  %s1217_s20 = sphi %s1276_s20, %s1515_s20   ;;  %s1213_s19 = sphi %s1274_s19, %s1514_s19   ;;  %s1209_s18 = sphi %s1272_s18, %s1513_s18  }
   0x5   : > { %s31_s26 = sadd.s32 1, %s1225_s22  ;;  %s176_s27 = sadd.s32 1, %s1217_s20 }
   0x6   : > { %p33_p0 = scmp.ge.s32.totalorder %s31_s26, 2  ;;  %p186_p1 = scmp.ne.s32.totalorder %s1217_s20, %s1213_s19 }
   0x7   : > { %p187_p2 = scmp.eq.s32.totalorder %s980_s24, 1  ;;  %p192_p3 = scmp.ne.s32.totalorder %s1213_s19, %s1209_s18 }
   0x8   : > { %s1519_s26 = smov (%p33_p0, %s31_s26), 0  ;;  %p193_p5 = scmp.eq.s32.totalorder %s981_s25, 1 }
   0x9   : > { %p1312_p4 = por %p187_p2, %p186_p1  ;;  %s171_s29 = ssub.s32 %s1225_s22, %s1519_s26 }
   0xa   : > { %p984_p6 = scmp.ge.s32.totalorder %s1229_s23, 1  ;;  %p174_p7 = scmp.eq.s32.totalorder %s171_s29, 0 }
   0xb   : > { %p1319_p8 = por %p193_p5, %p192_p3  ;;  %p245_p9 = scmp.lt.s32.totalorder %s1229_s23, 3 }
   0xc   : > { %s1325_s6 = scalar_select %p174_p7, %s1217_s20, %s176_s27  }
   0xd   : > { %p246_p10 = pnand %p984_p6, %p245_p9 }
   0xe   : > { %p297_p11 = scmp.lt.s32.totalorder (!%p246_p10), %s1221_s21, 1  ;;  %s1234_s25 = smov (!%p246_p10), 120  }
   0xf   : > { %249 = sbr.rel (%p246_p10) target bundleno = 1421 (0x58d), region = 36  ;;  %s1235_s27 = smov (!%p246_p10), 112  }
  0x10   : > { %s1236_s29 = smov (!%p246_p10), 104   ;;  %s1238_s17 = smov (!%p246_p10), 16  }
  0x14   : > { %v1231_v0 = vmov 0.0   ;;  %vm1232_vm0 = vmmov 0   ;;  %s298_s7 = scalar_select %p297_p11, %s1221_s21, 1  ;;  %vm338_vm1 = vcmask 64512   ;;  %v1233_v8 = vmov 0  }
  0x15   : > { %1024 = vmatprep.subr.bf16.mxu0 %v1231_v0  ;;  %1026 = vmatprep.mubr.msk.bf16.mxu0 %vm1232_vm0, %v1231_v0  ;;  %vm405_vm4 = vcmask 1043456  }
  0x16   : > { %1030 = vmatprep.subr.bf16.mxu1 %v1231_v0  ;;  %1032 = vmatprep.mubr.msk.bf16.mxu1 %vm1232_vm0, %v1231_v0  ;;  %s1335_s8 = sshll.u32 %s298_s7, 3  ;;  %s989_s15 = sshll.u32 %s298_s7, 1 }
  0x17   : > { %s307_s11 = scalar_lea.vmem %s1504_s1, %s1335_s8  ;;  %s303_s14 = scalar_lea.vmem %s1503_s0, %s1335_s8 }
  0x18   : > { %v332_v1 = vld [vmem:[%s307_s11] sm:$0xff]  ;;  %s318_s24 = scalar_lea.vmem %s1506_s3, %s989_s15  ;;  %s311_s10 = scalar_lea.vmem %s1505_s2, %s1335_s8 }
  0x19   : > { %v329_v2 = vld [vmem:[%s303_s14] sm:$0xff]  ;;  %v333_v3 = vpack.c.bf16 %v332_v1, %v332_v1  ;;  %s294_s11 = sand.u32 1, %s1213_s19   ;;  %s1402_s16 = scalar_lea.vmem %s1507_s4, %s1335_s8 }
  0x1a   : > { %v330_v5 = vmul.f32 0.35355338, %v329_v2  ;;  %v336_v7 = vld [vmem:[%s318_s24] sm:$0x3]  ;;  %s985_s12 = sshll.u32 %s294_s11, 5  ;;  %s1237_s8 = smov 8  }
  0x1b   : > { %v343_v4 = vsel %vm338_vm1, %v333_v3, 0  ;;  %vm337_vm2 = vnez %v336_v7  ;;  %454 = vrot.lane.b32.xlu1 %v333_v3, %s1234_s25  ;;  %v334_v23 = vld [vmem:[%s311_s10] sm:$0xff]  ;;  %s1380_s13 = scalar_lea.vmem [#allocation2], %s985_s12  ;;  %s1007_s24 = sshll.u32 %s1221_s21, 9 }
  0x1c   : > { %1025 = vmatpush3.bf16.xpose.msra.mxu0 %v343_v4  ;;  %v331_v6 = vpack.c.bf16 %v330_v5, %v330_v5  ;;  %v385_v9 = vsel %vm337_vm2, 16843009, %v1233_v8  ;;  %v1370_v24 = vpack.c.bf16 %v334_v23, %v334_v23  ;;  %s1448_s7 = scalar_lea.hbm %s1508_s5, %s1007_s24  ;;  %s1454_s9 = scalar_lea.sflag [#allocation3], %s294_s11 }
  0x1d   : > { %1042 = vmatprep.subr.bf16.mxu0 %v1231_v0  ;;  %v386_v10 = vunpack.c.0.s8 %v385_v9  ;;  %s1239_s21 = smov [#allocation2]  }
  0x1e   : > { %v407_v25 = vsel %vm405_vm4, %v1370_v24, 0  ;;  %s1157_s12 = sshll.u32 %s1239_s21, 4  ;;  %s1158_s12 = int_to_ptr.vmem [resolvable:$false] %s1157_s12 }
  0x1f   : > { %vm1353_vm3 = vcmp.ne.s32.totalorder %v386_v10, 0  ;;  %451 = vrot.lane.b32.xlu1 %v331_v6, %s1234_s25  ;;  %1031 = vmatpush3.bf16.msra.mxu1 %v407_v25 }
  0x20   : > { %1036 = vmatprep.subr.bf16.mxu1 %v1231_v0 }
  0x23   : > { %1027 = vmatmul.mubr.msk.bf16.vlgmr.msra.gmra.mxu0 %vm338_vm1, %v331_v6  ;;  %572 = vrot.lane.b32.xlu1 %v331_v6, %s1235_s27 }
  0x24   : > { %1044 = vmatprep.mubr.msk.bf16.mxu0 %vm1232_vm0, %v1231_v0 }
  0x27   : > { %693 = vrot.lane.b32.xlu1 %v333_v3, %s1236_s29 }
  0x2b   : > { %691 = vrot.lane.b32.xlu1 %v331_v6, %s1236_s29 }
  0x8d   : > { %v455_v28 = vpop.permute.xlu1 %454 }
  0x8e   : > { %v460_v30 = vsel %vm338_vm1, %v455_v28, 0 }
  0x91   : > { %v452_v32 = vpop.permute.xlu1 %451 }
  0x95   : > { %v573_v34 = vpop.permute.xlu1 %572 }
  0x99   : > { %v694_v36 = vpop.permute.xlu1 %693 }
  0x9a   : > { %v699_v37 = vsel %vm338_vm1, %v694_v36, 0 }
  0x9d   : > { %v692_v38 = vpop.permute.xlu1 %691 }
  0xe3   : > { %v379_v12 = vpop.f32.mrf.mxu0 }
  0xe4   : > { %v388_v13 = vsel %vm1353_vm3, -1e+18, %v379_v12 }
  0xe5   : > { %v1028_v14 = vpop.f32.mrf.mxu0  ;;  %v389_v15 = vsel %vm338_vm1, %v388_v13, -inf }
  0xe6   : > { %390 = vmax.xlane.f32.xlu0 %v389_v15 }
  0xe7   : > { %v382_v16 = vpop.f32.mrf.mxu0 }
  0xe9   : > { %v1029_v17 = vpop.f32.mrf.mxu0 }
 0x16f   : > { %v391_v18 = vpop.xlane.xlu0 %390 }
 0x170   : > { %v392_v19 = vsub.f32 %v388_v13, %v391_v18 }
 0x172   : > { %v393_v20 = vmul.f32 1.442695, %v392_v19 }
 0x174   : > { %1137 = vpow2.f32 %v393_v20 }
 0x181   : > { %v1138_v21 = vpop.eup %1137 }
 0x182   : > { %v395_v22 = vsel %vm338_vm1, %v1138_v21, 0.0 }
 0x183   : > { %396 = vadd.xlane.f32.xlu0 %v395_v22 }
 0x199   : > { %574 = vrot.lane.b32.xlu0 %v333_v3, %s1235_s27 }
 0x20c   : > { %v397_v26 = vpop.xlane.xlu0 %396 }
 0x20d   : > { %1139 = vrcp.f32 %v397_v26 }
 0x210   : > { %v575_v33 = vpop.permute.xlu0 %574 }
 0x211   : > { %v580_v35 = vsel %vm338_vm1, %v575_v33, 0 }
 0x21a   : > { %v1140_v27 = vpop.eup %1139 }
 0x21b   : > { %v399_v29 = vmul.f32 %v1140_v27, %v1138_v21 }
 0x21d   : > { %400 = vst.msk [vmem:[%s1380_s13] sm:$0xff] %vm338_vm1, %v399_v29  ;;  %v401_v31 = vpack.c.bf16 %v399_v29, %v399_v29 }
 0x21f   : > { %1033 = vmatmul.mubr.msk.bf16.vlgmr.msra.gmra.mxu1 %vm338_vm1, %v401_v31 }
 0x220   : > { %1037 = vmatpush3.bf16.xpose.msra.mxu1 %v460_v30  ;;  %1038 = vmatprep.mubr.msk.bf16.mxu1 %vm1232_vm0, %v1231_v0 }
 0x221   : > { %1048 = vmatprep.subr.bf16.mxu1 %v1231_v0 }
 0x227   : > { %1039 = vmatmul.mubr.msk.bf16.vlgmr.msra.gmra.mxu1 %vm338_vm1, %v452_v32 }
 0x228   : > { %1049 = vmatpush3.bf16.xpose.msra.mxu1 %v580_v35  ;;  %1050 = vmatprep.mubr.msk.bf16.mxu1 %vm1232_vm0, %v1231_v0 }
 0x229   : > { %1060 = vmatprep.subr.bf16.mxu1 %v1231_v0 }
 0x22f   : > { %1051 = vmatmul.mubr.msk.bf16.vlgmr.msra.gmra.mxu1 %vm338_vm1, %v573_v34 }
 0x230   : > { %1061 = vmatpush3.bf16.xpose.msra.mxu1 %v699_v37  ;;  %1062 = vmatprep.mubr.msk.bf16.mxu1 %vm1232_vm0, %v1231_v0 }
 0x237   : > { %1063 = vmatmul.mubr.msk.bf16.vlgmr.msra.gmra.mxu1 %vm338_vm1, %v692_v38 }
 0x2df   : > { %v443_v39 = vpop.f32.mrf.mxu1 }
 0x2e0   : > { %449 = vst.msk [vmem:[%s1402_s16] sm:$0xff] %vm338_vm1, %v443_v39 }
 0x2e1   : > { %v1034_v40 = vpop.f32.mrf.mxu1 }
 0x2e3   : > { %v446_v41 = vpop.f32.mrf.mxu1 }
 0x2e5   : > { %v1035_v42 = vpop.f32.mrf.mxu1 }
 0x2e7   : > { %v496_v43 = vpop.f32.mrf.mxu1 }
 0x2e8   : > { %v502_v44 = vsel %vm1353_vm3, -1e+18, %v496_v43 }
 0x2e9   : > { %v1040_v45 = vpop.f32.mrf.mxu1  ;;  %v503_v46 = vsel %vm338_vm1, %v502_v44, -inf }
 0x2ea   : > { %504 = vmax.xlane.f32.xlu1 %v503_v46 }
 0x2eb   : > { %v499_v47 = vpop.f32.mrf.mxu1 }
 0x2ed   : > { %v1041_v48 = vpop.f32.mrf.mxu1 }
 0x2ef   : > { %v616_v49 = vpop.f32.mrf.mxu1 }
 0x2f0   : > { %v622_v50 = vsel %vm1353_vm3, -1e+18, %v616_v49 }
 0x2f1   : > { %v1052_v51 = vpop.f32.mrf.mxu1  ;;  %v623_v52 = vsel %vm338_vm1, %v622_v50, -inf }
 0x2f2   : > { %624 = vmax.xlane.f32.xlu0 %v623_v52 }
 0x2f3   : > { %v619_v53 = vpop.f32.mrf.mxu1 }
 0x2f5   : > { %v1053_v54 = vpop.f32.mrf.mxu1 }
 0x2f7   : > { %v735_v55 = vpop.f32.mrf.mxu1 }
 0x2f8   : > { %v741_v56 = vsel %vm1353_vm3, -1e+18, %v735_v55 }
 0x2f9   : > { %v742_v57 = vsel %vm338_vm1, %v741_v56, -inf  ;;  %v1064_v58 = vpop.f32.mrf.mxu1 }
 0x2fa   : > { %743 = vmax.xlane.f32.xlu1 %v742_v57 }
 0x2fb   : > { %v738_v59 = vpop.f32.mrf.mxu1 }
 0x2fd   : > { %v1065_v60 = vpop.f32.mrf.mxu1 }
 0x373   : > { %v505_v61 = vpop.xlane.xlu1 %504 }
 0x374   : > { %v506_v62 = vsub.f32 %v502_v44, %v505_v61 }
 0x376   : > { %v507_v63 = vmul.f32 1.442695, %v506_v62 }
 0x378   : > { %1141 = vpow2.f32 %v507_v63 }
 0x37b   : > { %v625_v1 = vpop.xlane.xlu0 %624 }
 0x37c   : > { %v626_v2 = vsub.f32 %v622_v50, %v625_v1 }
 0x37e   : > { %v627_v3 = vmul.f32 1.442695, %v626_v2 }
 0x380   : > { %1143 = vpow2.f32 %v627_v3 }
 0x383   : > { %v744_v8 = vpop.xlane.xlu1 %743 }
 0x384   : > { %v745_v9 = vsub.f32 %v741_v56, %v744_v8 }
 0x385   : > { %v1142_v4 = vpop.eup %1141 }
 0x386   : > { %v509_v5 = vsel %vm338_vm1, %v1142_v4, 0.0  ;;  %v746_v10 = vmul.f32 1.442695, %v745_v9 }
 0x387   : > { %510 = vadd.xlane.f32.xlu1 %v509_v5 }
 0x388   : > { %1145 = vpow2.f32 %v746_v10 }
 0x38d   : > { %v1144_v6 = vpop.eup %1143 }
 0x38e   : > { %v629_v7 = vsel %vm338_vm1, %v1144_v6, 0.0 }
 0x38f   : > { %630 = vadd.xlane.f32.xlu0 %v629_v7 }
 0x395   : > { %v1146_v11 = vpop.eup %1145 }
 0x396   : > { %v748_v12 = vsel %vm338_vm1, %v1146_v11, 0.0 }
 0x398   : > { %637 = vrot.lane.b32.xlu1 %v1370_v24, %s1235_s27 }
 0x3a5   : > { %518 = vrot.lane.b32.xlu0 %v1370_v24, %s1234_s25  ;;  %s835_s25 = sshll.u32 %s1380_s13, 4  ;;  %s1450_s25 = int_to_ptr.vmem [resolvable:$true] %s835_s25 }
 0x3a6   : > { %s1153_s10 = scalar_lea.vmem %s1450_s25, 512  ;;  %p1160_p1 = scmp.lt.s32.totalorder %s1450_s25, %s1158_s12 }
 0x3a7   : > { %p1154_p12 = scmp.ne.s32.totalorder %s1450_s25, %s1153_s10 }
 0x3a9   : > { %p1155_p13 = pnand %p1154_p12, %p1312_p4 }
 0x3ab   : > { %p1156_p0 = pneg %p1155_p13 }
 0x3bc   : > { %749 = vadd.xlane.f32.xlu1 %v748_v12 }
 0x3cd   : > { %756 = vrot.lane.b32.xlu1 %v1370_v24, %s1236_s29 }
 0x410   : > { %v511_v13 = vpop.xlane.xlu1 %510 }
 0x411   : > { %1147 = vrcp.f32 %v511_v13 }
 0x414   : > { %v638_v19 = vpop.permute.xlu1 %637 }
 0x415   : > { %v643_v21 = vsel %vm405_vm4, %v638_v19, 0 }
 0x418   : > { %v631_v14 = vpop.xlane.xlu0 %630 }
 0x419   : > { %1149 = vrcp.f32 %v631_v14 }
 0x41c   : > { %v519_v15 = vpop.permute.xlu0 %518 }
 0x41d   : > { %v524_v16 = vsel %vm405_vm4, %v519_v15, 0 }
 0x41e   : > { %v1148_v17 = vpop.eup %1147  ;;  %1043 = vmatpush3.bf16.msra.mxu0 %v524_v16 }
 0x41f   : > { %1054 = vmatprep.subr.bf16.mxu0 %v1231_v0  ;;  %v513_v18 = vmul.f32 %v1148_v17, %v1142_v4 }
 0x421   : > { %994 = vst.msk [vmem:[%s1380_s13 + $0x8] sm:$0xff] %vm338_vm1, %v513_v18  ;;  %v516_v20 = vpack.c.bf16 %v513_v18, %v513_v18 }
 0x423   : > { %1045 = vmatmul.mubr.msk.bf16.vlgmr.msra.gmra.mxu0 %vm338_vm1, %v516_v20 }
 0x424   : > { %1055 = vmatpush3.bf16.msra.mxu0 %v643_v21  ;;  %1056 = vmatprep.mubr.msk.bf16.mxu0 %vm1232_vm0, %v1231_v0 }
 0x425   : > { %1066 = vmatprep.subr.bf16.mxu0 %v1231_v0 }
 0x426   : > { %v1150_v22 = vpop.eup %1149 }
 0x427   : > { %v633_v23 = vmul.f32 %v1150_v22, %v1144_v6 }
 0x429   : > { %997 = vst.msk [vmem:[%s1380_s13 + $0x10] sm:$0xff] %vm338_vm1, %v633_v23  ;;  %v636_v24 = vpack.c.bf16 %v633_v23, %v633_v23 }
 0x42b   : > { %1057 = vmatmul.mubr.msk.bf16.vlgmr.msra.gmra.mxu0 %vm338_vm1, %v636_v24 }
 0x42c   : > { %1068 = vmatprep.mubr.msk.bf16.mxu0 %vm1232_vm0, %v1231_v0 }
 0x445   : > { %v750_v25 = vpop.xlane.xlu1 %749 }
 0x446   : > { %1151 = vrcp.f32 %v750_v25 }
 0x449   : > { %v757_v26 = vpop.permute.xlu1 %756 }
 0x44a   : > { %v762_v27 = vsel %vm405_vm4, %v757_v26, 0 }
 0x44b   : > { %1067 = vmatpush3.bf16.msra.mxu0 %v762_v27 }
 0x453   : > { %v1152_v28 = vpop.eup %1151 }
 0x454   : > { %v752_v29 = vmul.f32 %v1152_v28, %v1146_v11 }
 0x456   : > { %1000 = vst.msk [vmem:[%s1380_s13 + $0x18] sm:$0xff] %vm338_vm1, %v752_v29  ;;  %v755_v30 = vpack.c.bf16 %v752_v29, %v752_v29  ;;  %s1159_s13 = scalar_lea.vmem %s1158_s12, 1024 }
 0x457   : > { %p1161_p2 = scmp.lt.s32.totalorder %s1159_s13, %s1153_s10 }
 0x458   : > { %1069 = vmatmul.mubr.msk.bf16.vlgmr.msra.gmra.mxu0 %vm338_vm1, %v755_v30 }
 0x459   : > { %p1162_p3 = por %p1161_p2, %p1160_p1 }
 0x45b   : > { %p1163_p5 = pnand %p1162_p3, %p1156_p0 }
 0x4e3   : > { %v560_v31 = vpop.f32.mrf.mxu0 }
 0x4e4   : > { %567 = vrot.lane.b32.xlu0 %v560_v31, %s1237_s8 }
 0x4e5   : > { %v1046_v0 = vpop.f32.mrf.mxu0 }
 0x4e7   : > { %v563_v32 = vpop.f32.mrf.mxu0 }
 0x4e9   : > { %v1047_v33 = vpop.f32.mrf.mxu0 }
 0x4eb   : > { %v679_v34 = vpop.f32.mrf.mxu0 }
 0x4ec   : > { %686 = vrot.lane.b32.xlu1 %v679_v34, %s1238_s17 }
 0x4ed   : > { %v1058_v35 = vpop.f32.mrf.mxu0 }
 0x4ef   : > { %v682_v36 = vpop.f32.mrf.mxu0 }
 0x4f1   : > { %v1059_v37 = vpop.f32.mrf.mxu0 }
 0x4f2   : > { %1166 = shalt.err (!%p1163_p5)
}
 0x4f3   : > { %s1167_s11 = scalar_lea.hbm %s1448_s7, 512  ;;  %s1171_s17 = scalar_lea.hbm %s1508_s5, 1024 }
 0x4f4   : > { %p1168_p6 = scmp.ne.s32.totalorder %s1448_s7, %s1167_s11  ;;  %p1172_p10 = scmp.lt.s32.totalorder %s1448_s7, %s1508_s5 }
 0x4f5   : > { %p1173_p11 = scmp.lt.s32.totalorder %s1171_s17, %s1167_s11 }
 0x4f6   : > { %p1169_p7 = pnand %p1168_p6, %p1312_p4 }
 0x4f7   : > { %p1174_p12 = por %p1173_p11, %p1172_p10 }
 0x4f8   : > { %p1170_p9 = pneg %p1169_p7 }
 0x4fa   : > { %p1175_p13 = pnand %p1174_p12, %p1170_p9 }
 0x4fc   : > { %1178 = shalt.err (!%p1175_p13)
}
 0x4fd   : > { %s1240_s29 = smov 128   ;;  %s1241_s10 = smov 24   ;;  %vm570_vm5 = vcmask 130112   ;;  %vm689_vm6 = vcmask 195712   ;;  %vm808_vm7 = vcmask 261312  }
 0x4fe   : > { %1072 = dma.vmem_to_hbm [thread:$0]  (%p1312_p4), %s1450_s25, 512, %s1448_s7, %s1454_s9, %s1240_s29, %s1240_s29, %s1237_s8  }
 0x518   : > { %v798_v38 = vpop.f32.mrf.mxu0 }
 0x519   : > { %805 = vrot.lane.b32.xlu0 %v798_v38, %s1241_s10 }
 0x51a   : > { %v1070_v39 = vpop.f32.mrf.mxu0 }
 0x51c   : > { %v801_v40 = vpop.f32.mrf.mxu0 }
 0x51e   : > { %v1071_v41 = vpop.f32.mrf.mxu0 }
 0x556   : > { %v568_v42 = vpop.permute.xlu0 %567 }
 0x557   : > { %571 = vst.msk [vmem:[%s1402_s16] sm:$0xff] %vm570_vm5, %v568_v42 }
 0x55e   : > { %v687_v43 = vpop.permute.xlu1 %686 }
 0x55f   : > { %690 = vst.msk [vmem:[%s1402_s16] sm:$0xff] %vm689_vm6, %v687_v43 }
 0x58b   : > { %v806_v44 = vpop.permute.xlu0 %805 }
 0x58c   : > { %809 = vst.msk [vmem:[%s1402_s16] sm:$0xff] %vm808_vm7, %v806_v44 }
 0x58d PF: > { %p1078_p4 = scmp.ge.s32.totalorder %s1229_s23, 2  ;;  %s860_s28 = sand.u32 1, %s1209_s18  }
 0x58e   : > { %s861_s8 = scalar_lea.sflag [#allocation3], %s860_s28 }
 0x58f   : > { %p1075_p0 = pnand %p1078_p4, %p1319_p8 }
 0x591   : > { %p1076_p1 = pneg %p1075_p0 }
 0x593   : > { %1204 = dma.done.wait (%p1076_p1), %s861_s8, 512  }
 0x594   : > { %1206 = vsyncadd (%p1076_p1), %s861_s8, 4294966784  ;;  %s19_s23 = sadd.s32 1, %s1229_s23   ;;  %s1513_s18 = smov %s1213_s19 }
 0x595   : > { %p16_p2 = scmp.ge.s32.totalorder %s19_s23, 4   ;;  %s1514_s19 = smov %s1217_s20 }
 0x596   : > { %s1515_s20 = smov %s1325_s6  ;;  %s1516_s21 = smov %s1225_s22 }
 0x597   : > { %s1517_s22 = smov %s1519_s26  ;;  %18 = sbr.rel (!%p16_p2) target bundleno = 4 (0x4), region = 95 }
 0x59c   :  { %866 = vsyncpa [#allocation3], 1 }
 0x59d   :  { %868 = vsyncpa [#allocation3 + $0x1], 1 }

</bundles_post_ra>
